<compile_context>
chip_gen: v5e
topology: v5e:2x2
jax: 0.10.0
libtpu: 0.0.40
codegen_flags: <defaults>
</compile_context>

<pallas_src>
import functools

import jax
import jax.numpy as jnp
from jax.experimental import pallas as pl
from jax.experimental.pallas import tpu as pltpu


def _bert_embedding_kernel(seed_ref, seq_ref,                               # scalar prefetch (SMEM)
                           seg_ids_ref, tok_ref, seg_tab_ref, pos_ref,      # inputs
                           out_ref,                                         # output
                           gather_buf, gather_sem,                          # scratch
                           *, tile_rows, chunk_rows, n_chunks, issue_unroll,
                           n_seg, dropout_p, training, resident_table):
    # seq_ref     : (B*S,) int32 in SMEM     — token ids (scalar prefetch)
    # seg_ids_ref : (tile_rows, 1) int32     — segment ids for this row tile
    # tok_ref     : (V, E)  — HBM ref (DMA gather) or resident VMEM block
    # seg_tab_ref : (pad, E)                 — padded segment table (rows >= n_seg are 0)
    # pos_ref     : (tile_rows, E)           — positional rows aligned to this tile
    # out_ref     : (tile_rows, E)
    # gather_buf  : (tile_rows, E) VMEM scratch for gathered token rows
    # gather_sem  : (n_chunks,) DMA semaphores — one per chunk
    t = pl.program_id(0)
    base = t * tile_rows

    # ---- token embedding gather -------------------------------------------
    if resident_table:
        # Small-table fast path: the table is resident in VMEM; plain
        # dynamic-slice row copies, no DMA descriptors / semaphore waits.
        @pl.loop(0, tile_rows // issue_unroll)
        def _copy(i):
            for j in range(issue_unroll):                 # static unroll
                r = i * issue_unroll + j
                tok_id = seq_ref[base + r]
                gather_buf[pl.ds(r, 1), :] = tok_ref[pl.ds(tok_id, 1), :]
    else:
        # Large table stays in HBM: issue ALL per-row DMA gathers up front so
        # every chunk is in flight before the first compute.  Every copy is a
        # single (1, E) row of the same dtype (identical byte count), and the
        # rows of chunk c all signal gather_sem[c], so one aggregate wait per
        # chunk is exact.
        for c in range(n_chunks):                         # static
            lo = c * chunk_rows

            @pl.loop(0, chunk_rows // issue_unroll)
            def _issue(i, lo=lo, c=c):
                for j in range(issue_unroll):             # static unroll (x8)
                    r = lo + i * issue_unroll + j
                    tok_id = seq_ref[base + r]
                    pltpu.make_async_copy(tok_ref.at[pl.ds(tok_id, 1)],
                                          gather_buf.at[pl.ds(r, 1)],
                                          gather_sem.at[c]).start()

    use_dropout = training and dropout_p > 0.0
    if use_dropout and dropout_p < 1.0:
        pltpu.prng_seed(seed_ref[0], t)                   # independent per-tile stream
        # Clamp: dropout_p ~ 1.0 could round to 2**32 and overflow uint32.
        thresh = jnp.uint32(min(int(round(dropout_p * (2.0 ** 32))), 2 ** 32 - 1))
        inv_keep = jnp.float32(1.0 / (1.0 - dropout_p))

    # ---- per chunk: wait -> add pos/seg -> dropout -> store -----------------
    # While chunk c is being computed/stored, the DMAs for chunks c+1.. are
    # still landing (intra-tile overlap, keeps grid axis "parallel" for v7x).
    for c in range(n_chunks):                             # static
        lo = c * chunk_rows
        if not resident_table:
            # One AGGREGATE wait for this chunk's chunk_rows identical row
            # copies.  The descriptor only supplies the byte count + semaphore;
            # src/dst use always-in-bounds gather_buf slices of the same shape.
            pltpu.make_async_copy(gather_buf.at[pl.ds(lo, chunk_rows)],
                                  gather_buf.at[pl.ds(lo, chunk_rows)],
                                  gather_sem.at[c]).wait()

        x = (gather_buf[pl.ds(lo, chunk_rows), :].astype(jnp.float32)
             + pos_ref[pl.ds(lo, chunk_rows), :].astype(jnp.float32))

        # Segment embedding: tiny table -> nested VPU selects (no MXU, no
        # int->float casts / multiplies).
        seg_col = seg_ids_ref[pl.ds(lo, chunk_rows), :]                 # (chunk, 1) int32
        seg = seg_tab_ref[n_seg - 1, :].astype(jnp.float32)             # (E,)
        for k in range(n_seg - 2, -1, -1):
            seg = jnp.where(seg_col == k,
                            seg_tab_ref[k, :].astype(jnp.float32), seg)
        x = x + seg

        # Dropout (train mode only; eval is identity).
        if use_dropout:
            if dropout_p >= 1.0:
                x = jnp.zeros_like(x)
            else:
                bits = pltpu.bitcast(pltpu.prng_random_bits(x.shape), jnp.uint32)
                x = jnp.where(bits >= thresh, x * inv_keep, 0.0)

        out_ref[pl.ds(lo, chunk_rows), :] = x.astype(out_ref.dtype)


def _choose_tile_rows(batch, seq, row_align, target=512):
    """Row-tile size: divides batch*seq, is a multiple or divisor of seq (so
    positional rows tile cleanly), is a multiple of row_align (the (8,128) /
    packed-sublane rule) unless it equals the whole array, and prefers >= 2
    tiles so both v7x TensorCores get work."""
    rows = batch * seq
    cands = set()
    for m in range(1, batch + 1):                         # tile = m full sequences
        if batch % m == 0:
            tr = m * seq
            if tr % row_align == 0 or tr == rows:
                cands.add(tr)
    for d in range(1, seq + 1):                           # tile = divisor of one sequence
        if seq % d == 0 and d % row_align == 0:
            cands.add(d)
    if not cands:
        return rows                                       # tiny fallback: single full tile
    small = [tr for tr in cands if tr <= target]
    pool = small if small else [min(cands)]
    multi = [tr for tr in pool if rows // tr >= 2]        # prefer >= 2 tiles (megacore)
    return max(multi) if multi else max(pool)


def _choose_chunking(tile_rows, row_align, chunk_target=128, issue_unroll=8):
    """Chunk size for intra-tile DMA/compute overlap (aligned, divides tile)."""
    chunk_rows = tile_rows
    if tile_rows % row_align == 0:
        start = min(tile_rows, max(chunk_target, row_align))
        start -= start % row_align
        for cand in range(start, row_align - 1, -row_align):
            if tile_rows % cand == 0:
                chunk_rows = cand
                break
    n_chunks = tile_rows // chunk_rows
    unroll = issue_unroll if chunk_rows % issue_unroll == 0 else 1
    return chunk_rows, n_chunks, unroll


def bert_embedding(seq_ids, seg_ids, tok_table, seg_table, pos_embed, *,
                   dropout_p=0.1, training=False, seed=0,
                   tile_rows=None, tile_target=512, chunk_target=128,
                   issue_unroll=8, small_table_bytes=2 << 20,
                   force_dma_gather=False):
    """seq_ids, seg_ids: (B, S) int; tok_table: (V, E); seg_table: (3, E);
    pos_embed: (1, max_len, E).  Returns (B, S, E) in tok_table's dtype.
    Pass bf16 tables / pos_embed to roughly halve HBM traffic (math is f32)."""
    B, S = seq_ids.shape
    V, E = tok_table.shape
    R = B * S
    dtype = tok_table.dtype
    itemsize = jnp.dtype(dtype).itemsize
    row_align = max(8, 32 // itemsize)                    # 8 for f32, 16 for bf16

    if tile_rows is None:
        tile_rows = _choose_tile_rows(B, S, row_align, target=tile_target)
    assert R % tile_rows == 0
    assert tile_rows % S == 0 or S % tile_rows == 0
    n_tiles = R // tile_rows
    chunk_rows, n_chunks, unroll = _choose_chunking(tile_rows, row_align,
                                                    chunk_target, issue_unroll)

    table_bytes = V * E * itemsize
    resident_table = (not force_dma_gather) and table_bytes <= small_table_bytes
    # TODO(synk): sub-32-bit vocab tables on the DMA-gather path would need a
    # pltpu.bitcast pack (2 x bf16 -> u32 per row) for efficient single-row
    # DMAs; use the resident-table path or pre-pack for bf16 token tables.

    n_seg = seg_table.shape[0]                            # 3
    n_seg_pad = ((n_seg + row_align - 1) // row_align) * row_align
    seg_tab_padded = jnp.zeros((n_seg_pad, E), dtype).at[:n_seg].set(seg_table.astype(dtype))

    # Positional rows, pre-aligned to the row tiling so the kernel does plain adds.
    pos = pos_embed[0, :S, :].astype(dtype)               # (S, E)
    if tile_rows % S == 0:
        reps = tile_rows // S
        pos_in = pos if reps == 1 else jnp.tile(pos, (reps, 1))
        pos_map = lambda t, *_: (0, 0)
    else:                                                 # S % tile_rows == 0
        pos_in = pos
        npos = S // tile_rows
        pos_map = lambda t, *_: (t % npos, 0)

    seq_flat = seq_ids.astype(jnp.int32).reshape(R)       # -> SMEM via scalar prefetch
    # TODO(synk): at very large B*S (>~128K tokens) the whole-sequence scalar
    # prefetch approaches SMEM capacity; switch token ids to per-tile SMEM
    # blocks (or adopt a cross-step gather prefetch, which needs next-tile ids).
    seg_flat = seg_ids.astype(jnp.int32).reshape(R, 1)
    seed_arr = jnp.array([seed], dtype=jnp.int32)

    if resident_table:
        tok_spec = pl.BlockSpec((V, E), lambda t, *_: (0, 0))   # resident in VMEM
    else:
        tok_spec = pl.BlockSpec(memory_space=pl.ANY)            # table stays in HBM

    kernel = functools.partial(
        _bert_embedding_kernel,
        tile_rows=tile_rows, chunk_rows=chunk_rows, n_chunks=n_chunks,
        issue_unroll=unroll, n_seg=n_seg, dropout_p=float(dropout_p),
        training=bool(training), resident_table=resident_table)

    grid_spec = pltpu.PrefetchScalarGridSpec(
        num_scalar_prefetch=2,                                  # seed + token ids -> SMEM
        grid=(n_tiles,),
        in_specs=[
            pl.BlockSpec((tile_rows, 1), lambda t, *_: (t, 0)),   # segment ids for this tile
            tok_spec,                                             # token table
            pl.BlockSpec((n_seg_pad, E), lambda t, *_: (0, 0)),   # tiny segment table (VMEM)
            pl.BlockSpec((tile_rows, E), pos_map),                # positional rows
        ],
        out_specs=pl.BlockSpec((tile_rows, E), lambda t, *_: (t, 0)),
        scratch_shapes=[
            pltpu.VMEM((tile_rows, E), dtype),                    # gathered token rows
            pltpu.SemaphoreType.DMA((n_chunks,)),                 # one DMA sem per chunk
        ],
    )

    # Explicit VMEM budget: v7x has 64 MiB physical / 32 MiB default scoped,
    # v5e defaults to a 16 MiB scoped limit.  Estimate the per-step footprint.
    blk = tile_rows * E * itemsize
    est = (3 * blk                                # 2x double-buffered out + gather scratch
           + 2 * pos_in.size * itemsize           # double-buffered positional block
           + 2 * tile_rows * 128 * 4              # seg-id blocks (lane-padded)
           + 2 * seg_tab_padded.size * itemsize
           + (table_bytes if resident_table else 0))
    vmem_limit = int(min(100 << 20, max(32 << 20, 2 * est)))

    out_flat = pl.pallas_call(
        kernel,
        out_shape=jax.ShapeDtypeStruct((R, E), dtype),
        grid_spec=grid_spec,
        compiler_params=pltpu.CompilerParams(
            # Row tiles are independent -> keep "parallel" so v7x's two
            # TensorCores split the grid.
            # TODO(synk): on single-TC v5e/v6e a cross-step double-buffered
            # gather (grid axis "arbitrary", prefetch tile t+1's rows) would
            # hide the gather entirely; not done here to preserve v7x megacore.
            dimension_semantics=("parallel",),
            vmem_limit_bytes=vmem_limit),
    )(seed_arr, seq_flat, seg_flat, tok_table, seg_tab_padded, pos_in)

    return out_flat.reshape(B, S, E)


if __name__ == "__main__":
    # Small, module-consistent shapes.  E is a multiple of 128 so stores are lane-dense.
    B, S, E = 2, 8, 128
    VOCAB = 64
    MAX_LEN = 64            # module default is 1000; only [:S] is ever used

    key = jax.random.PRNGKey(0)
    k_tok, k_seg, k_pos, k_ids, k_lab = jax.random.split(key, 5)

    # nn.Embedding default init: N(0,1); padding_idx=0 row zeroed.
    tok_table = jax.random.normal(k_tok, (VOCAB, E), jnp.float32).at[0].set(0.0)
    seg_table = jax.random.normal(k_seg, (3, E), jnp.float32).at[0].set(0.0)
    # nn.init.trunc_normal_(std=0.02) on pos_embed.
    pos_embed = 0.02 * jax.random.truncated_normal(k_pos, -2.0, 2.0,
                                                   (1, MAX_LEN, E), jnp.float32)

    sequence = jax.random.randint(k_ids, (B, S), 0, VOCAB, dtype=jnp.int32)
    segment_label = jax.random.randint(k_lab, (B, S), 0, 3, dtype=jnp.int32)

    # Eval-mode runs (dropout = identity) so outputs are deterministic.
    # 1) Default path: small vocab -> resident-table fast path.
    out_fast = bert_embedding(sequence, segment_label, tok_table, seg_table,
                              pos_embed, dropout_p=0.1, training=False)
    # 2) Force the HBM DMA-gather path (the real BERT-vocab path) as well.
    out_dma = bert_embedding(sequence, segment_label, tok_table, seg_table,
                             pos_embed, dropout_p=0.1, training=False,
                             force_dma_gather=True)
    out_fast, out_dma = jax.block_until_ready((out_fast, out_dma))

    # Pure-JAX reference of the PyTorch forward (eval mode).
    ref = tok_table[sequence] + seg_table[segment_label] + pos_embed[:, :S, :]
    assert out_fast.shape == (B, S, E) and out_dma.shape == (B, S, E)
    assert jnp.allclose(out_fast, ref, atol=1e-5, rtol=1e-5), "resident-table path mismatch"
    assert jnp.allclose(out_dma, ref, atol=1e-5, rtol=1e-5), "DMA-gather path mismatch"

    # TODO(synk): train-mode dropout uses the TPU hardware PRNG; same
    # distribution / inverted-dropout scaling as torch.nn.Dropout but it will
    # not bit-match torch's RNG stream.
    print("KERNEL_OK")
</pallas_src>

<mosaic_0001>
module attributes {stable_mosaic.version = 11 : i64} {
  func.func @_bert_embedding_kernel(%arg0: i32, %arg1: memref<1xi32, #tpu.memory_space<smem>>, %arg2: memref<16xi32, #tpu.memory_space<smem>>, %arg3: memref<8x1xi32, #tpu.memory_space<vmem>>, %arg4: memref<64x128xf32, #tpu.memory_space<vmem>>, %arg5: memref<8x128xf32, #tpu.memory_space<vmem>>, %arg6: memref<8x128xf32, #tpu.memory_space<vmem>>, %arg7: memref<8x128xf32, #tpu.memory_space<vmem>>, %arg8: memref<8x128xf32, #tpu.memory_space<vmem>>, %arg9: memref<1x!tpu.dma_semaphore, #tpu.memory_space<semaphore_mem>>) attributes {dimension_semantics = [#tpu.dimension_semantics<parallel>], iteration_bounds = array<i64: 2>, scalar_prefetch = 2 : i64, scratch_operands = 2 : i64, tpu.core_type = #tpu.core_type<tc>, window_params = [{transform_indices = @transform_0, window_bounds = array<i64: 8, 1>}, {pipeline_mode = #tpu.pipeline_mode<synchronous>, transform_indices = @transform_1, window_bounds = array<i64: 64, 128>}, {pipeline_mode = #tpu.pipeline_mode<synchronous>, transform_indices = @transform_2, window_bounds = array<i64: 8, 128>}, {pipeline_mode = #tpu.pipeline_mode<synchronous>, transform_indices = @transform_3, window_bounds = array<i64: 8, 128>}, {transform_indices = @transform_4, window_bounds = array<i64: 8, 128>}]} {
    %c8_i32 = arith.constant 8 : i32
    %0 = arith.muli %arg0, %c8_i32 : i32
    %c0_i32 = arith.constant 0 : i32
    %c1_i32 = arith.constant 1 : i32
    %1 = arith.muli %c0_i32, %c1_i32 : i32
    %c0_i32_0 = arith.constant 0 : i32
    %2 = arith.addi %c0_i32_0, %1 : i32
    %c8_i32_1 = arith.constant 8 : i32
    %3 = arith.muli %2, %c8_i32_1 : i32
    %c0_i32_2 = arith.constant 0 : i32
    %4 = arith.addi %3, %c0_i32_2 : i32
    %5 = arith.addi %0, %4 : i32
    %6 = arith.index_cast %5 : i32 to index
    %7 = memref.load %arg2[%6] : memref<16xi32, #tpu.memory_space<smem>>
    %8 = arith.index_cast %7 : i32 to index
    %c0 = arith.constant 0 : index
    %9 = vector.load %arg4[%8, %c0] : memref<64x128xf32, #tpu.memory_space<vmem>>, vector<1x128xf32>
    %10 = arith.index_cast %4 : i32 to index
    %c0_3 = arith.constant 0 : index
    %11 = vector.load %arg8[%10, %c0_3] : memref<8x128xf32, #tpu.memory_space<vmem>>, vector<1x128xf32>
    tpu.vector_store %arg8[%10, %c0_3], %9 {strides = array<i32>} : memref<8x128xf32, #tpu.memory_space<vmem>>, vector<1x128xf32>,
    %c8_i32_4 = arith.constant 8 : i32
    %12 = arith.muli %2, %c8_i32_4 : i32
    %c1_i32_5 = arith.constant 1 : i32
    %13 = arith.addi %12, %c1_i32_5 : i32
    %14 = arith.addi %0, %13 : i32
    %15 = arith.index_cast %14 : i32 to index
    %16 = memref.load %arg2[%15] : memref<16xi32, #tpu.memory_space<smem>>
    %17 = arith.index_cast %16 : i32 to index
    %c0_6 = arith.constant 0 : index
    %18 = vector.load %arg4[%17, %c0_6] : memref<64x128xf32, #tpu.memory_space<vmem>>, vector<1x128xf32>
    %19 = arith.index_cast %13 : i32 to index
    %c0_7 = arith.constant 0 : index
    %20 = vector.load %arg8[%19, %c0_7] : memref<8x128xf32, #tpu.memory_space<vmem>>, vector<1x128xf32>
    tpu.vector_store %arg8[%19, %c0_7], %18 {strides = array<i32>} : memref<8x128xf32, #tpu.memory_space<vmem>>, vector<1x128xf32>,
    %c8_i32_8 = arith.constant 8 : i32
    %21 = arith.muli %2, %c8_i32_8 : i32
    %c2_i32 = arith.constant 2 : i32
    %22 = arith.addi %21, %c2_i32 : i32
    %23 = arith.addi %0, %22 : i32
    %24 = arith.index_cast %23 : i32 to index
    %25 = memref.load %arg2[%24] : memref<16xi32, #tpu.memory_space<smem>>
    %26 = arith.index_cast %25 : i32 to index
    %c0_9 = arith.constant 0 : index
    %27 = vector.load %arg4[%26, %c0_9] : memref<64x128xf32, #tpu.memory_space<vmem>>, vector<1x128xf32>
    %28 = arith.index_cast %22 : i32 to index
    %c0_10 = arith.constant 0 : index
    %29 = vector.load %arg8[%28, %c0_10] : memref<8x128xf32, #tpu.memory_space<vmem>>, vector<1x128xf32>
    tpu.vector_store %arg8[%28, %c0_10], %27 {strides = array<i32>} : memref<8x128xf32, #tpu.memory_space<vmem>>, vector<1x128xf32>,
    %c8_i32_11 = arith.constant 8 : i32
    %30 = arith.muli %2, %c8_i32_11 : i32
    %c3_i32 = arith.constant 3 : i32
    %31 = arith.addi %30, %c3_i32 : i32
    %32 = arith.addi %0, %31 : i32
    %33 = arith.index_cast %32 : i32 to index
    %34 = memref.load %arg2[%33] : memref<16xi32, #tpu.memory_space<smem>>
    %35 = arith.index_cast %34 : i32 to index
    %c0_12 = arith.constant 0 : index
    %36 = vector.load %arg4[%35, %c0_12] : memref<64x128xf32, #tpu.memory_space<vmem>>, vector<1x128xf32>
    %37 = arith.index_cast %31 : i32 to index
    %c0_13 = arith.constant 0 : index
    %38 = vector.load %arg8[%37, %c0_13] : memref<8x128xf32, #tpu.memory_space<vmem>>, vector<1x128xf32>
    tpu.vector_store %arg8[%37, %c0_13], %36 {strides = array<i32>} : memref<8x128xf32, #tpu.memory_space<vmem>>, vector<1x128xf32>,
    %c8_i32_14 = arith.constant 8 : i32
    %39 = arith.muli %2, %c8_i32_14 : i32
    %c4_i32 = arith.constant 4 : i32
    %40 = arith.addi %39, %c4_i32 : i32
    %41 = arith.addi %0, %40 : i32
    %42 = arith.index_cast %41 : i32 to index
    %43 = memref.load %arg2[%42] : memref<16xi32, #tpu.memory_space<smem>>
    %44 = arith.index_cast %43 : i32 to index
    %c0_15 = arith.constant 0 : index
    %45 = vector.load %arg4[%44, %c0_15] : memref<64x128xf32, #tpu.memory_space<vmem>>, vector<1x128xf32>
    %46 = arith.index_cast %40 : i32 to index
    %c0_16 = arith.constant 0 : index
    %47 = vector.load %arg8[%46, %c0_16] : memref<8x128xf32, #tpu.memory_space<vmem>>, vector<1x128xf32>
    tpu.vector_store %arg8[%46, %c0_16], %45 {strides = array<i32>} : memref<8x128xf32, #tpu.memory_space<vmem>>, vector<1x128xf32>,
    %c8_i32_17 = arith.constant 8 : i32
    %48 = arith.muli %2, %c8_i32_17 : i32
    %c5_i32 = arith.constant 5 : i32
    %49 = arith.addi %48, %c5_i32 : i32
    %50 = arith.addi %0, %49 : i32
    %51 = arith.index_cast %50 : i32 to index
    %52 = memref.load %arg2[%51] : memref<16xi32, #tpu.memory_space<smem>>
    %53 = arith.index_cast %52 : i32 to index
    %c0_18 = arith.constant 0 : index
    %54 = vector.load %arg4[%53, %c0_18] : memref<64x128xf32, #tpu.memory_space<vmem>>, vector<1x128xf32>
    %55 = arith.index_cast %49 : i32 to index
    %c0_19 = arith.constant 0 : index
    %56 = vector.load %arg8[%55, %c0_19] : memref<8x128xf32, #tpu.memory_space<vmem>>, vector<1x128xf32>
    tpu.vector_store %arg8[%55, %c0_19], %54 {strides = array<i32>} : memref<8x128xf32, #tpu.memory_space<vmem>>, vector<1x128xf32>,
    %c8_i32_20 = arith.constant 8 : i32
    %57 = arith.muli %2, %c8_i32_20 : i32
    %c6_i32 = arith.constant 6 : i32
    %58 = arith.addi %57, %c6_i32 : i32
    %59 = arith.addi %0, %58 : i32
    %60 = arith.index_cast %59 : i32 to index
    %61 = memref.load %arg2[%60] : memref<16xi32, #tpu.memory_space<smem>>
    %62 = arith.index_cast %61 : i32 to index
    %c0_21 = arith.constant 0 : index
    %63 = vector.load %arg4[%62, %c0_21] : memref<64x128xf32, #tpu.memory_space<vmem>>, vector<1x128xf32>
    %64 = arith.index_cast %58 : i32 to index
    %c0_22 = arith.constant 0 : index
    %65 = vector.load %arg8[%64, %c0_22] : memref<8x128xf32, #tpu.memory_space<vmem>>, vector<1x128xf32>
    tpu.vector_store %arg8[%64, %c0_22], %63 {strides = array<i32>} : memref<8x128xf32, #tpu.memory_space<vmem>>, vector<1x128xf32>,
    %c8_i32_23 = arith.constant 8 : i32
    %66 = arith.muli %2, %c8_i32_23 : i32
    %c7_i32 = arith.constant 7 : i32
    %67 = arith.addi %66, %c7_i32 : i32
    %68 = arith.addi %0, %67 : i32
    %69 = arith.index_cast %68 : i32 to index
    %70 = memref.load %arg2[%69] : memref<16xi32, #tpu.memory_space<smem>>
    %71 = arith.index_cast %70 : i32 to index
    %c0_24 = arith.constant 0 : index
    %72 = vector.load %arg4[%71, %c0_24] : memref<64x128xf32, #tpu.memory_space<vmem>>, vector<1x128xf32>
    %73 = arith.index_cast %67 : i32 to index
    %c0_25 = arith.constant 0 : index
    %74 = vector.load %arg8[%73, %c0_25] : memref<8x128xf32, #tpu.memory_space<vmem>>, vector<1x128xf32>
    tpu.vector_store %arg8[%73, %c0_25], %72 {strides = array<i32>} : memref<8x128xf32, #tpu.memory_space<vmem>>, vector<1x128xf32>,
    %c1_i32_26 = arith.constant 1 : i32
    %c0_27 = arith.constant 0 : index
    %c0_28 = arith.constant 0 : index
    %75 = vector.load %arg8[%c0_27, %c0_28] : memref<8x128xf32, #tpu.memory_space<vmem>>, vector<8x128xf32>
    %c0_29 = arith.constant 0 : index
    %c0_30 = arith.constant 0 : index
    %76 = vector.load %arg6[%c0_29, %c0_30] : memref<8x128xf32, #tpu.memory_space<vmem>>, vector<8x128xf32>
    %77 = arith.addf %75, %76 : vector<8x128xf32>
    %c0_31 = arith.constant 0 : index
    %c0_32 = arith.constant 0 : index
    %78 = vector.load %arg3[%c0_31, %c0_32] : memref<8x1xi32, #tpu.memory_space<vmem>>, vector<8x1xi32>
    %c2 = arith.constant 2 : index
    %c0_33 = arith.constant 0 : index
    %79 = vector.load %arg5[%c2, %c0_33] : memref<8x128xf32, #tpu.memory_space<vmem>>, vector<1x128xf32>
    %80 = vector.shape_cast %79 : vector<1x128xf32> to vector<128xf32>
    %c1_i32_34 = arith.constant 1 : i32
    %81 = vector.broadcast %c1_i32_34 : i32 to vector<8x1xi32>
    %82 = arith.cmpi eq, %78, %81 : vector<8x1xi32>
    %c1 = arith.constant 1 : index
    %c0_35 = arith.constant 0 : index
    %83 = vector.load %arg5[%c1, %c0_35] : memref<8x128xf32, #tpu.memory_space<vmem>>, vector<1x128xf32>
    %84 = vector.shape_cast %83 : vector<1x128xf32> to vector<128xf32>
    %85 = vector.shape_cast %82 : vector<8x1xi1> to vector<8x1xi1>
    %86 = vector.broadcast %85 : vector<8x1xi1> to vector<8x128xi1>
    %87 = vector.shape_cast %84 : vector<128xf32> to vector<1x128xf32>
    %88 = vector.broadcast %87 : vector<1x128xf32> to vector<8x128xf32>
    %89 = vector.shape_cast %80 : vector<128xf32> to vector<1x128xf32>
    %90 = vector.broadcast %89 : vector<1x128xf32> to vector<8x128xf32>
    %91 = arith.select %86, %88, %90 : vector<8x128xi1>, vector<8x128xf32>
    %c0_i32_36 = arith.constant 0 : i32
    %92 = vector.broadcast %c0_i32_36 : i32 to vector<8x1xi32>
    %93 = arith.cmpi eq, %78, %92 : vector<8x1xi32>
    %c0_37 = arith.constant 0 : index
    %c0_38 = arith.constant 0 : index
    %94 = vector.load %arg5[%c0_37, %c0_38] : memref<8x128xf32, #tpu.memory_space<vmem>>, vector<1x128xf32>
    %95 = vector.shape_cast %94 : vector<1x128xf32> to vector<128xf32>
    %96 = vector.shape_cast %93 : vector<8x1xi1> to vector<8x1xi1>
    %97 = vector.broadcast %96 : vector<8x1xi1> to vector<8x128xi1>
    %98 = vector.shape_cast %95 : vector<128xf32> to vector<1x128xf32>
    %99 = vector.broadcast %98 : vector<1x128xf32> to vector<8x128xf32>
    %100 = arith.select %97, %99, %91 : vector<8x128xi1>, vector<8x128xf32>
    %101 = arith.addf %77, %100 : vector<8x128xf32>
    %c0_39 = arith.constant 0 : index
    %c0_40 = arith.constant 0 : index
    %102 = vector.load %arg7[%c0_39, %c0_40] : memref<8x128xf32, #tpu.memory_space<vmem>>, vector<8x128xf32>
    tpu.vector_store %arg7[%c0_39, %c0_40], %101 {strides = array<i32>} : memref<8x128xf32, #tpu.memory_space<vmem>>, vector<8x128xf32>,
    return
  }
  func.func @transform_0(%arg0: i32, %arg1: memref<1xi32, #tpu.memory_space<smem>>, %arg2: memref<16xi32, #tpu.memory_space<smem>>) -> (i32, i32) {
    %c0_i32 = arith.constant 0 : i32
    %c0_i32_0 = arith.constant 0 : i32
    return %arg0, %c0_i32 : i32, i32
  }
  func.func @transform_1(%arg0: i32, %arg1: memref<1xi32, #tpu.memory_space<smem>>, %arg2: memref<16xi32, #tpu.memory_space<smem>>) -> (i32, i32) {
    %c0_i32 = arith.constant 0 : i32
    %c0_i32_0 = arith.constant 0 : i32
    %c0_i32_1 = arith.constant 0 : i32
    return %c0_i32, %c0_i32_0 : i32, i32
  }
  func.func @transform_2(%arg0: i32, %arg1: memref<1xi32, #tpu.memory_space<smem>>, %arg2: memref<16xi32, #tpu.memory_space<smem>>) -> (i32, i32) {
    %c0_i32 = arith.constant 0 : i32
    %c0_i32_0 = arith.constant 0 : i32
    %c0_i32_1 = arith.constant 0 : i32
    return %c0_i32, %c0_i32_0 : i32, i32
  }
  func.func @transform_3(%arg0: i32, %arg1: memref<1xi32, #tpu.memory_space<smem>>, %arg2: memref<16xi32, #tpu.memory_space<smem>>) -> (i32, i32) {
    %c0_i32 = arith.constant 0 : i32
    %c0_i32_0 = arith.constant 0 : i32
    %c0_i32_1 = arith.constant 0 : i32
    return %c0_i32, %c0_i32_0 : i32, i32
  }
  func.func @transform_4(%arg0: i32, %arg1: memref<1xi32, #tpu.memory_space<smem>>, %arg2: memref<16xi32, #tpu.memory_space<smem>>) -> (i32, i32) {
    %c0_i32 = arith.constant 0 : i32
    %c0_i32_0 = arith.constant 0 : i32
    return %arg0, %c0_i32 : i32, i32
  }
}

</mosaic_0001>

<bundles_post_ra>
// kernel: tpu_custom_call.1
= control target key start
LH: loop header
LB: loop body
LE: loop exit
PB: predicated region body
PF: predicated region fallthrough
CT: control target
= control target key end

     0   :  { %s572_s23 = smov [#allocation6]   ;;  %s733_s0 = inlined_call_operand.<no memory space> [shape: s32[1], index: 0, kind: input, shape index: {}]   ;;  %s734_s1 = inlined_call_operand.vmem [shape: s32[16], index: 1, kind: input, shape index: {}]   ;;  %s735_s2 = inlined_call_operand.vmem [shape: s32[16,1], index: 2, kind: input, shape index: {}]   ;;  %s736_s3 = inlined_call_operand.hbm [shape: f32[64,128], index: 3, kind: input, shape index: {}]   ;;  %s737_s4 = inlined_call_operand.vmem [shape: f32[8,128], index: 4, kind: input, shape index: {}]   ;;  %s738_s5 = inlined_call_operand.vmem [shape: f32[8,128], index: 5, kind: input, shape index: {}]   ;;  %s739_s6 = inlined_call_operand.hbm [shape: f32[16,128], index: 6, kind: output, shape index: {}]  }
   0x1   :  { %740 = sst [smem:[#allocation14_spill]] %s735_s2  ;;  %s13_s22 = sshll.u32 %s734_s1, 4  ;;  %s14_s22 = int_to_ptr.vmem [resolvable:$true] %s13_s22 }
   0x2   :  { %741 = sst [smem:[#allocation15_spill]] %s736_s3 }
   0x3   :  { %16 = dma.vmem_to_smem %s14_s22, 16, %s572_s23, [#allocation4] }
   0x4   :  { %546 = dma.done.wait [#allocation4], 16 }
   0x5   :  { %547 = vsyncadd [#allocation4], 4294967280 }
   0x6   :  { %19 = sfence }
   0x7   :  { %20 = vsyncpa [#allocation8], 0 }
   0x8   :  { %21 = vsyncpa [#allocation9], 0 }
   0x9   :  { %23 = vsyncpa [#allocation9 + $0x1], 0  ;;  %s615_s24 = smov 0   ;;  %s617_s25 = smov 0  }
   0xa   :  { %s619_s26 = smov 0   ;;  %s621_s27 = smov 0  }
   0xb LB: > { %s636_s1 = sadd.s32 4294967295, %s570_s27   ;;  %s388_s28 = sadd.s32 4294967294, %s570_s27   ;;  %s570_s27 = sphi %s621_s27, %s749_s27   ;;  %s566_s26 = sphi %s619_s26, %s748_s26   ;;  %s562_s25 = sphi %s617_s25, %s747_s25   ;;  %s558_s24 = sphi %s615_s24, %s746_s24  }
   0xc   : > { %s640_s29 = sadd.s32 1, %s570_s27   ;;  %s125_s30 = sadd.s32 1, %s566_s26 }
   0xd   : > { %s122_s7 = ssub.s32 %s570_s27, %s640_s29  ;;  %p135_p0 = scmp.ne.s32.totalorder %s566_s26, %s562_s25 }
   0xe   : > { %p123_p1 = scmp.eq.s32.totalorder %s122_s7, 0  ;;  %p136_p2 = scmp.eq.s32.totalorder %s636_s1, 1 }
   0xf   : > { %p141_p3 = scmp.ne.s32.totalorder %s562_s25, %s558_s24  ;;  %p142_p4 = scmp.eq.s32.totalorder %s388_s28, 1 }
  0x10   : > { %s651_s8 = scalar_select %p123_p1, %s566_s26, %s125_s30  }
  0x11   : > { %p653_p5 = por %p136_p2, %p135_p0  ;;  %p657_p6 = por %p142_p4, %p141_p3 }
  0x12   : > { %p389_p7 = scmp.ge.s32.totalorder %s570_s27, 1  ;;  %p149_p8 = scmp.lt.s32.totalorder %s570_s27, 3 }
  0x13   : > { %p416_p9 = scmp.eq.s32.totalorder %s636_s1, 0  ;;  %s744_s3 = sld [smem:[#allocation15_spill]] }
  0x14   : > { %p150_p10 = pnand %p389_p7, %p149_p8  ;;  %s573_s14 = smov [#allocation7]  }
  0x15   : > { %s162_s15 = sshll.u32 %s573_s14, 4  ;;  %s574_s16 = smov 128   ;;  %s163_s15 = int_to_ptr.vmem [resolvable:$true] %s162_s15 }
  0x16   : > { %p408_p11 = pneg %p150_p10  ;;  %s575_s17 = smov 8  }
  0x17   : > { %191 = sbr.rel (%p150_p10) target bundleno = 169 (0xa9), region = 36 }
  0x18   : > { %p409_p12 = pnand %p416_p9, %p408_p11 }
  0x19   : > { %s160_s13 = sshll.u32 %s744_s3, 4  ;;  %s161_s13 = int_to_ptr.hbm [resolvable:$true] %s160_s13 }
  0x1a   : > { %411 = dma.hbm_to_vmem [thread:$0]  (!%p409_p12), %s161_s13, 1024, %s163_s15, [#allocation8], %s574_s16, %s574_s16, %s575_s17  }
  0x1c   : > { %549 = dma.done.wait (%p416_p9), [#allocation8], 1024  }
  0x1d   : > { %551 = vsyncadd (%p416_p9), [#allocation8], 4294966272  ;;  %p217_p13 = scmp.lt.s32.totalorder %s636_s1, 1  ;;  %v576_v0 = vmov 0   ;;  %s745_s2 = sld [smem:[#allocation14_spill]]  ;;  %v262_v14 = vld [vmem:[%s738_s5] sm:$0xff] }
  0x1e   : > { %456 = vset.pattern.permute.xlu0 %v576_v0  ;;  %s679_s22 = sshll.u32 %s636_s1, 3  ;;  %v457_v15 = vld [vmem:[%s737_s4 + $0x1] ss:$0 sm:$0xff]  ;;  %v458_v16 = vld [vmem:[%s737_s4 + $0x2] ss:$0 sm:$0xff] }
  0x1f   : > { %s218_s18 = scalar_select %p217_p13, %s636_s1, 1  ;;  %v459_v17 = vld [vmem:[%s737_s4] ss:$0 sm:$0xff] }
  0x20   : > { %s226_s23 = sadd.s32 1, %s679_s22  ;;  %s231_s28 = sadd.s32 2, %s679_s22 }
  0x21   : > { %s395_s19 = sshll.u32 %s218_s18, 3  ;;  %s236_s30 = sadd.s32 3, %s679_s22 }
  0x22   : > { %s222_s7 = sld [smem:[#allocation6 + %s679_s22]]  ;;  %s241_s11 = sadd.s32 4, %s679_s22 }
  0x23   : > { %s220_s0 = scalar_lea.vmem %s745_s2, %s395_s19  ;;  %s227_s12 = sld [smem:[#allocation6 + %s226_s23]] }
  0x24   : > { %v264_v1 = vld [vmem:[%s220_s0] sm:$0xff]  ;;  %s246_s13 = sadd.s32 5, %s679_s22  ;;  %s232_s14 = sld [smem:[#allocation6 + %s231_s28]] }
  0x25   : > { %vm266_vm0 = vcmp.eq.s32.totalorder %v264_v1, 1  ;;  %vm276_vm1 = vcmp.eq.s32.totalorder %v264_v1, 0  ;;  %s237_s15 = sld [smem:[#allocation6 + %s236_s30]]  ;;  %s251_s16 = sadd.s32 6, %s679_s22 }
  0x26   : > { %v268_v2 = vsel %vm266_vm0, 1, %v576_v0  ;;  %v278_v3 = vsel %vm276_vm1, 1, %v576_v0  ;;  %s242_s1 = sld [smem:[#allocation6 + %s241_s11]]  ;;  %s256_s17 = sadd.s32 7, %s679_s22 }
  0x27   : > { %270 = vperm.xlu0 %456, %v268_v2   ;;  %s247_s18 = sld [smem:[#allocation6 + %s246_s13]] }
  0x28   : > { %s252_s19 = sld [smem:[#allocation6 + %s251_s16]]  ;;  %s223_s21 = scalar_lea.vmem [#allocation7], %s222_s7 }
  0x29   : > { %s257_s20 = sld [smem:[#allocation6 + %s256_s17]]  ;;  %v224_v4 = vld [vmem:[%s223_s21] sm:$0x1]  ;;  %s228_s0 = scalar_lea.vmem [#allocation7], %s227_s12 }
  0x2a   : > { %v229_v5 = vld [vmem:[%s228_s0] sm:$0x1]  ;;  %s233_s2 = scalar_lea.vmem [#allocation7], %s232_s14  ;;  %225 = vst [vmem:[#allocation2] sm:$0x1] %v224_v4 }
  0x2b   : > { %v234_v6 = vld [vmem:[%s233_s2] sm:$0x1]  ;;  %s238_s3 = scalar_lea.vmem [#allocation7], %s237_s15  ;;  %230 = vst [vmem:[#allocation2 + $0x1] sm:$0x1] %v229_v5  ;;  %s214_s2 = sand.u32 1, %s562_s25  }
  0x2c   : > { %v239_v7 = vld [vmem:[%s238_s3] sm:$0x1]  ;;  %s243_s23 = scalar_lea.vmem [#allocation7], %s242_s1  ;;  %235 = vst [vmem:[#allocation2 + $0x2] sm:$0x1] %v234_v6  ;;  %s394_s3 = sshll.u32 %s214_s2, 3 }
  0x2d   : > { %v244_v8 = vld [vmem:[%s243_s23] sm:$0x1]  ;;  %s248_s28 = scalar_lea.vmem [#allocation7], %s247_s18  ;;  %240 = vst [vmem:[#allocation2 + $0x3] sm:$0x1] %v239_v7  ;;  %s298_s18 = scalar_lea.hbm %s739_s6, %s679_s22 }
  0x2e   : > { %v249_v9 = vld [vmem:[%s248_s28] sm:$0x1]  ;;  %s253_s30 = scalar_lea.vmem [#allocation7], %s252_s19  ;;  %245 = vst [vmem:[#allocation2 + $0x4] sm:$0x1] %v244_v8  ;;  %s216_s21 = scalar_lea.vmem [#allocation10], %s394_s3 }
  0x2f   : > { %280 = vperm.xlu0 %456, %v278_v3   ;;  %v254_v10 = vld [vmem:[%s253_s30] sm:$0x1]  ;;  %s258_s7 = scalar_lea.vmem [#allocation7], %s257_s20  ;;  %250 = vst [vmem:[#allocation2 + $0x5] sm:$0x1] %v249_v9  ;;  %s300_s0 = sshll.u32 %s216_s21, 4  ;;  %s301_s0 = int_to_ptr.vmem [resolvable:$true] %s300_s0 }
  0x30   : > { %v259_v11 = vld [vmem:[%s258_s7] sm:$0x1]  ;;  %255 = vst [vmem:[#allocation2 + $0x6] sm:$0x1] %v254_v10  ;;  %s302_s23 = sshll.u32 %s298_s18, 4  ;;  %s288_s28 = scalar_lea.sflag [#allocation9], %s214_s2  ;;  %s303_s23 = int_to_ptr.hbm [resolvable:$true] %s302_s23 }
  0x31   : > { %260 = vst [vmem:[#allocation2 + $0x7] sm:$0x1] %v259_v11  ;;  %s516_s22 = sshra.s32 %s303_s23, 4  ;;  %s522_s3 = scalar_lea.hbm %s739_s6, 16  ;;  %s517_s22 = int_to_ptr.hbm [resolvable:$true] %s516_s22 }
  0x32   : > { %s518_s30 = scalar_lea.hbm %s517_s22, 8  ;;  %p523_p3 = scmp.lt.s32.totalorder %s517_s22, %s739_s6 }
  0x33   : > { %p519_p0 = scmp.ne.s32.totalorder %s517_s22, %s518_s30  ;;  %p524_p4 = scmp.lt.s32.totalorder %s522_s3, %s518_s30 }
  0x35   : > { %p520_p1 = pnand %p519_p0, %p653_p5  ;;  %p525_p7 = por %p524_p4, %p523_p3 }
  0x37   : > { %p521_p2 = pneg %p520_p1 }
  0x38   : > { %v261_v13 = vld [vmem:[#allocation2] sm:$0xff] }
  0x39   : > { %v263_v18 = vadd.f32 %v262_v14, %v261_v13  ;;  %p526_p8 = pnand %p525_p7, %p521_p2 }
  0x99   : > { %v271_v12 = vpop.permute.xlu0 %270 }
  0x9a   : > { %vm272_vm2 = vcmp.eq.s32.totalorder %v271_v12, 1 }
  0x9b   : > { %v275_v20 = vsel %vm272_vm2, %v457_v15, %v458_v16 }
  0xa1   : > { %v281_v19 = vpop.permute.xlu0 %280 }
  0xa2   : > { %vm282_vm3 = vcmp.eq.s32.totalorder %v281_v19, 1 }
  0xa3   : > { %v284_v21 = vsel %vm282_vm3, %v459_v17, %v275_v20 }
  0xa4   : > { %v285_v22 = vadd.f32 %v284_v21, %v263_v18 }
  0xa6   : > { %286 = vst [vmem:[%s216_s21] sm:$0xff] %v285_v22 }
  0xa7   : > { %529 = shalt.err (!%p526_p8)
}
  0xa8   : > { %406 = dma.vmem_to_hbm [thread:$0]  (%p653_p5), %s301_s0, 128, %s303_s23, %s288_s28  }
  0xa9 PF: > { %p418_p9 = scmp.ge.s32.totalorder %s570_s27, 2  ;;  %s314_s2 = sand.u32 1, %s558_s24  }
  0xaa   : > { %s315_s14 = scalar_lea.sflag [#allocation9], %s314_s2 }
  0xab   : > { %p413_p10 = pnand %p418_p9, %p657_p6 }
  0xad   : > { %p414_p11 = pneg %p413_p10 }
  0xaf   : > { %553 = dma.done.wait (%p414_p11), %s315_s14, 128  }
  0xb0   : > { %555 = vsyncadd (%p414_p11), %s315_s14, 4294967168  ;;  %p26_p12 = scmp.ge.s32.totalorder %s640_s29, 4   ;;  %s746_s24 = smov %s562_s25 }
  0xb1   : > { %s747_s25 = smov %s566_s26  ;;  %s748_s26 = smov %s651_s8 }
  0xb2   : > { %s749_s27 = smov %s640_s29  ;;  %28 = sbr.rel (!%p26_p12) target bundleno = 11 (0xb), region = 84 }
  0xb7   :  { %321 = vsyncpa [#allocation8], 1 }
  0xb8   :  { %323 = vsyncpa [#allocation8 + $0x1], 1 }
  0xb9   :  { %324 = vsyncpa [#allocation9], 1 }
  0xba   :  { %326 = vsyncpa [#allocation9 + $0x1], 1 }
  0xbb   :  { %327 = vsyncmov [#allocation3] }
  0xbe   :  { %s328_s27 = vpop.sfrf %327 }
  0xbf   :  { %p401_p5 = scmp.ne.s32.totalorder %s328_s27, 0 }
  0xc1   :  { %332 = shalt.err (%p401_p5)  }

</bundles_post_ra>
